<compile_context>
chip_gen: v5e
topology: v5e:2x2
jax: 0.10.0
libtpu: 0.0.40
codegen_flags: <defaults>
</compile_context>

<pallas_src>
import functools

import jax
import jax.numpy as jnp
from jax.experimental import pallas as pl
from jax.experimental.pallas import tpu as pltpu

_EPS = 1e-6  # torch.pairwise_distance default eps


def _triplet_loss_kernel(a_ref, p_ref, n_ref, o_ref, *, margin, batch, tile_b):
    i = pl.program_id(0)

    @pl.when(i == 0)
    def _init():
        o_ref[...] = jnp.zeros_like(o_ref)

    a = a_ref[...].astype(jnp.float32)
    p = p_ref[...].astype(jnp.float32)
    n = n_ref[...].astype(jnp.float32)

    dp = a - p + _EPS
    dn = a - n + _EPS

    # Row-wise squared L2 norms (reduce over the feature/lane axis).
    pos_sq = jnp.sum(dp * dp, axis=-1, keepdims=True)   # (TB, 1) == pos_dist**2
    neg_sq = jnp.sum(dn * dn, axis=-1, keepdims=True)   # (TB, 1)

    # Only the negative branch actually needs the sqrt (hinge on the distance).
    neg_dist = jnp.sqrt(neg_sq)
    hinge = jnp.maximum(margin - neg_dist, 0.0)
    per_row = pos_sq + hinge * hinge                     # (TB, 1)

    # Mask out-of-range rows of the (possibly partial) last tile.
    if batch % tile_b != 0:
        row = jax.lax.broadcasted_iota(jnp.int32, per_row.shape, 0) + i * tile_b
        per_row = jnp.where(row < batch, per_row, 0.0)

    # Accumulate the running sum in the resident (1,1) output block.
    o_ref[...] += jnp.sum(per_row, axis=0, keepdims=True)

    @pl.when(i == pl.num_programs(0) - 1)
    def _finalize():
        o_ref[...] = o_ref[...] * (1.0 / batch)


def _pick_tile_b(B, D, itemsize):
    # Keep 3 inputs x 2 pipeline buffers x tile under ~24 MiB so the kernel
    # double-buffers comfortably even on v7x's 64 MiB VMEM.
    budget = 24 * 1024 * 1024
    tb = budget // (6 * D * itemsize)
    tb = max(8, (tb // 8) * 8)
    if tb >= B:
        return B                      # whole batch fits in one block
    return tb


def triplet_loss(anchor, positive, negative, margin=0.0, tile_b=None):
    """Pallas TPU implementation of TripletLoss.forward. Inputs: (B, D)."""
    assert anchor.shape == positive.shape == negative.shape
    B, D = anchor.shape
    itemsize = jnp.dtype(anchor.dtype).itemsize

    if tile_b is None:
        tile_b = _pick_tile_b(B, D, itemsize)
    tile_b = min(int(tile_b), B)
    if tile_b < B:
        # Blocks smaller than the full batch dim must stay (8, ...)-aligned.
        tile_b = max(8, (tile_b // 8) * 8)

    n_tiles = pl.cdiv(B, tile_b)

    kernel = functools.partial(
        _triplet_loss_kernel, margin=float(margin), batch=B, tile_b=tile_b)

    # 3 inputs x 2 pipeline buffers per tile, plus a little headroom.
    vmem_needed = 3 * 2 * tile_b * D * itemsize + (2 << 20)
    vmem_limit = int(min(max(vmem_needed, 32 << 20), 48 << 20))

    out = pl.pallas_call(
        kernel,
        out_shape=jax.ShapeDtypeStruct((1, 1), jnp.float32),
        grid=(n_tiles,),
        in_specs=[
            pl.BlockSpec((tile_b, D), lambda i: (i, 0)),
            pl.BlockSpec((tile_b, D), lambda i: (i, 0)),
            pl.BlockSpec((tile_b, D), lambda i: (i, 0)),
        ],
        out_specs=pl.BlockSpec((1, 1), lambda i: (0, 0)),
        compiler_params=pltpu.CompilerParams(
            dimension_semantics=("arbitrary",),   # reduction axis (accumulator)
            vmem_limit_bytes=vmem_limit,
        ),
    )(anchor, positive, negative)
    return out[0, 0]


def _reference_triplet_loss(anchor, positive, negative, margin=0.0):
    # Pure-JAX reference mirroring torch.pairwise_distance semantics.
    a = anchor.astype(jnp.float32)
    p = positive.astype(jnp.float32)
    n = negative.astype(jnp.float32)
    pos_dist = jnp.sqrt(jnp.sum((a - p + _EPS) ** 2, axis=-1, keepdims=True))
    neg_dist = jnp.sqrt(jnp.sum((a - n + _EPS) ** 2, axis=-1, keepdims=True))
    return jnp.mean(pos_dist ** 2 + jnp.maximum(margin - neg_dist, 0.0) ** 2)


if __name__ == "__main__":
    key = jax.random.PRNGKey(0)
    k_a, k_p, k_n = jax.random.split(key, 3)

    # Small embedding batch; B deliberately not a multiple of the forced tile
    # so the masked tail-tile path is exercised too.
    B, D = 20, 128
    anchor = jax.random.normal(k_a, (B, D), dtype=jnp.float32)
    positive = jax.random.normal(k_p, (B, D), dtype=jnp.float32)
    negative = jax.random.normal(k_n, (B, D), dtype=jnp.float32)

    margin = 1.0  # module default is 0.0; 1.0 exercises the clamp branch

    # Multi-tile path: tile_b=8 -> 3 grid steps, last one partially masked.
    loss_tiled = jax.block_until_ready(
        triplet_loss(anchor, positive, negative, margin=margin, tile_b=8))
    # Auto tile size (single block here since the problem is tiny).
    loss_auto = jax.block_until_ready(
        triplet_loss(anchor, positive, negative, margin=margin))

    ref = _reference_triplet_loss(anchor, positive, negative, margin=margin)
    assert jnp.allclose(loss_tiled, ref, rtol=1e-5, atol=1e-5), (loss_tiled, ref)
    assert jnp.allclose(loss_auto, ref, rtol=1e-5, atol=1e-5), (loss_auto, ref)

    print("KERNEL_OK")
</pallas_src>

<mosaic_0001>
module attributes {stable_mosaic.version = 11 : i64} {
  func.func @_triplet_loss_kernel(%arg0: i32, %arg1: memref<8x128xf32, #tpu.memory_space<vmem>>, %arg2: memref<8x128xf32, #tpu.memory_space<vmem>>, %arg3: memref<8x128xf32, #tpu.memory_space<vmem>>, %arg4: memref<1x1xf32, #tpu.memory_space<vmem>>) attributes {dimension_semantics = [#tpu.dimension_semantics<arbitrary>], iteration_bounds = array<i64: 3>, scalar_prefetch = 0 : i64, scratch_operands = 0 : i64, tpu.core_type = #tpu.core_type<tc>, window_params = [{transform_indices = @transform_0, window_bounds = array<i64: 8, 128>}, {transform_indices = @transform_1, window_bounds = array<i64: 8, 128>}, {transform_indices = @transform_2, window_bounds = array<i64: 8, 128>}, {pipeline_mode = #tpu.pipeline_mode<synchronous>, transform_indices = @transform_3, window_bounds = array<i64: 1, 1>}]} {
    %c0_i32 = arith.constant 0 : i32
    %0 = arith.cmpi eq, %arg0, %c0_i32 : i32
    %1 = arith.extui %0 : i1 to i32
    %c0_i32_0 = arith.constant 0 : i32
    %2 = arith.cmpi ne, %1, %c0_i32_0 : i32
    scf.if %2 {
      %cst_18 = arith.constant 0.000000e+00 : f32
      %41 = vector.broadcast %cst_18 : f32 to vector<1x1xf32>
      %c0_19 = arith.constant 0 : index
      %c0_20 = arith.constant 0 : index
      %42 = vector.load %arg4[%c0_19, %c0_20] : memref<1x1xf32, #tpu.memory_space<vmem>>, vector<1x1xf32>
      tpu.vector_store %arg4[%c0_19, %c0_20], %41 {strides = array<i32>} : memref<1x1xf32, #tpu.memory_space<vmem>>, vector<1x1xf32>,
    } else {
    }
    %c0 = arith.constant 0 : index
    %c0_1 = arith.constant 0 : index
    %3 = vector.load %arg1[%c0, %c0_1] : memref<8x128xf32, #tpu.memory_space<vmem>>, vector<8x128xf32>
    %c0_2 = arith.constant 0 : index
    %c0_3 = arith.constant 0 : index
    %4 = vector.load %arg2[%c0_2, %c0_3] : memref<8x128xf32, #tpu.memory_space<vmem>>, vector<8x128xf32>
    %c0_4 = arith.constant 0 : index
    %c0_5 = arith.constant 0 : index
    %5 = vector.load %arg3[%c0_4, %c0_5] : memref<8x128xf32, #tpu.memory_space<vmem>>, vector<8x128xf32>
    %6 = arith.subf %3, %4 : vector<8x128xf32>
    %cst = arith.constant 9.99999997E-7 : f32
    %7 = vector.broadcast %cst : f32 to vector<8x128xf32>
    %8 = arith.addf %6, %7 : vector<8x128xf32>
    %9 = arith.subf %3, %5 : vector<8x128xf32>
    %cst_6 = arith.constant 9.99999997E-7 : f32
    %10 = vector.broadcast %cst_6 : f32 to vector<8x128xf32>
    %11 = arith.addf %9, %10 : vector<8x128xf32>
    %12 = arith.mulf %8, %8 : vector<8x128xf32>
    %cst_7 = arith.constant dense<0.000000e+00> : vector<8xf32>
    %13 = vector.multi_reduction <add>, %12, %cst_7 [1] : vector<8x128xf32> to vector<8xf32>
    %14 = vector.shape_cast %13 : vector<8xf32> to vector<8x1xf32>
    %15 = arith.mulf %11, %11 : vector<8x128xf32>
    %cst_8 = arith.constant dense<0.000000e+00> : vector<8xf32>
    %16 = vector.multi_reduction <add>, %15, %cst_8 [1] : vector<8x128xf32> to vector<8xf32>
    %17 = vector.shape_cast %16 : vector<8xf32> to vector<8x1xf32>
    %18 = math.sqrt %17 : vector<8x1xf32>
    %cst_9 = arith.constant 1.000000e+00 : f32
    %19 = vector.broadcast %cst_9 : f32 to vector<8x1xf32>
    %20 = arith.subf %19, %18 : vector<8x1xf32>
    %cst_10 = arith.constant 0.000000e+00 : f32
    %21 = vector.broadcast %cst_10 : f32 to vector<8x1xf32>
    %22 = arith.maximumf %20, %21 : vector<8x1xf32>
    %23 = arith.mulf %22, %22 : vector<8x1xf32>
    %24 = arith.addf %14, %23 : vector<8x1xf32>
    %25 = tpu.iota {dimensions = array<i32: 0>} : vector<8x1xi32>
    %c8_i32 = arith.constant 8 : i32
    %26 = arith.muli %arg0, %c8_i32 : i32
    %27 = vector.broadcast %26 : i32 to vector<8x1xi32>
    %28 = arith.addi %25, %27 : vector<8x1xi32>
    %c20_i32 = arith.constant 20 : i32
    %29 = vector.broadcast %c20_i32 : i32 to vector<8x1xi32>
    %30 = arith.cmpi slt, %28, %29 : vector<8x1xi32>
    %cst_11 = arith.constant 0.000000e+00 : f32
    %31 = vector.broadcast %cst_11 : f32 to vector<8x1xf32>
    %32 = arith.select %30, %24, %31 : vector<8x1xi1>, vector<8x1xf32>
    %c0_12 = arith.constant 0 : index
    %c0_13 = arith.constant 0 : index
    %33 = vector.load %arg4[%c0_12, %c0_13] : memref<1x1xf32, #tpu.memory_space<vmem>>, vector<1x1xf32>
    %cst_14 = arith.constant dense<0.000000e+00> : vector<1xf32>
    %34 = vector.multi_reduction <add>, %32, %cst_14 [0] : vector<8x1xf32> to vector<1xf32>
    %35 = vector.shape_cast %34 : vector<1xf32> to vector<1x1xf32>
    %36 = arith.addf %33, %35 : vector<1x1xf32>
    %c0_15 = arith.constant 0 : index
    %c0_16 = arith.constant 0 : index
    %37 = vector.load %arg4[%c0_15, %c0_16] : memref<1x1xf32, #tpu.memory_space<vmem>>, vector<1x1xf32>
    tpu.vector_store %arg4[%c0_15, %c0_16], %36 {strides = array<i32>} : memref<1x1xf32, #tpu.memory_space<vmem>>, vector<1x1xf32>,
    %c2_i32 = arith.constant 2 : i32
    %38 = arith.cmpi eq, %arg0, %c2_i32 : i32
    %39 = arith.extui %38 : i1 to i32
    %c0_i32_17 = arith.constant 0 : i32
    %40 = arith.cmpi ne, %39, %c0_i32_17 : i32
    scf.if %40 {
      %c0_18 = arith.constant 0 : index
      %c0_19 = arith.constant 0 : index
      %41 = vector.load %arg4[%c0_18, %c0_19] : memref<1x1xf32, #tpu.memory_space<vmem>>, vector<1x1xf32>
      %cst_20 = arith.constant 5.000000e-02 : f32
      %42 = vector.broadcast %cst_20 : f32 to vector<1x1xf32>
      %43 = arith.mulf %41, %42 : vector<1x1xf32>
      %c0_21 = arith.constant 0 : index
      %c0_22 = arith.constant 0 : index
      %44 = vector.load %arg4[%c0_21, %c0_22] : memref<1x1xf32, #tpu.memory_space<vmem>>, vector<1x1xf32>
      tpu.vector_store %arg4[%c0_21, %c0_22], %43 {strides = array<i32>} : memref<1x1xf32, #tpu.memory_space<vmem>>, vector<1x1xf32>,
    } else {
    }
    return
  }
  func.func @transform_0(%arg0: i32) -> (i32, i32) {
    %c0_i32 = arith.constant 0 : i32
    %c0_i32_0 = arith.constant 0 : i32
    return %arg0, %c0_i32 : i32, i32
  }
  func.func @transform_1(%arg0: i32) -> (i32, i32) {
    %c0_i32 = arith.constant 0 : i32
    %c0_i32_0 = arith.constant 0 : i32
    return %arg0, %c0_i32 : i32, i32
  }
  func.func @transform_2(%arg0: i32) -> (i32, i32) {
    %c0_i32 = arith.constant 0 : i32
    %c0_i32_0 = arith.constant 0 : i32
    return %arg0, %c0_i32 : i32, i32
  }
  func.func @transform_3(%arg0: i32) -> (i32, i32) {
    %c0_i32 = arith.constant 0 : i32
    %c0_i32_0 = arith.constant 0 : i32
    %c0_i32_1 = arith.constant 0 : i32
    return %c0_i32, %c0_i32_0 : i32, i32
  }
}

</mosaic_0001>

<bundles_post_ra>
// kernel: tpu_custom_call.1
= control target key start
LH: loop header
LB: loop body
LE: loop exit
PB: predicated region body
PF: predicated region fallthrough
CT: control target
= control target key end

     0   :  { %8 = vsyncpa [#allocation3], 0  ;;  %s822_s0 = inlined_call_operand.hbm [shape: f32[20,128], index: 0, kind: input, shape index: {}]   ;;  %s823_s1 = inlined_call_operand.hbm [shape: f32[20,128], index: 1, kind: input, shape index: {}]   ;;  %s824_s2 = inlined_call_operand.hbm [shape: f32[20,128], index: 2, kind: input, shape index: {}]   ;;  %s825_s3 = inlined_call_operand.hbm [shape: f32[1,1], index: 3, kind: output, shape index: {}]  }
   0x1   :  { %10 = vsyncpa [#allocation3 + $0x1], 0 }
   0x2   :  { %11 = vsyncpa [#allocation6], 0 }
   0x3   :  { %13 = vsyncpa [#allocation6 + $0x1], 0 }
   0x4   :  { %14 = vsyncpa [#allocation4], 0  ;;  %s675_s12 = smov 0   ;;  %s677_s13 = smov 0  }
   0x5   :  { %s679_s14 = smov 0   ;;  %s681_s15 = smov 0  }
   0x6 LB: > { %s694_s16 = sadd.s32 4294967295, %s651_s15   ;;  %s697_s17 = sadd.s32 1, %s651_s15   ;;  %s651_s15 = sphi %s681_s15, %s832_s15   ;;  %s647_s14 = sphi %s679_s14, %s831_s14   ;;  %s643_s13 = sphi %s677_s13, %s830_s13   ;;  %s639_s12 = sphi %s675_s12, %s829_s12  }
   0x7   : > { %s24_s18 = ssub.s32 %s651_s15, %s697_s17  ;;  %s27_s19 = sadd.s32 1, %s647_s14 }
   0x8   : > { %p25_p0 = scmp.eq.s32.totalorder %s24_s18, 0  ;;  %p34_p1 = scmp.ne.s32.totalorder %s647_s14, %s643_s13 }
   0x9   : > { %p35_p2 = scmp.eq.s32.totalorder %s651_s15, 0  ;;  %p40_p3 = scmp.ne.s32.totalorder %s643_s13, %s639_s12 }
   0xa   : > { %s707_s20 = scalar_select %p25_p0, %s647_s14, %s27_s19  }
   0xb   : > { %p36_p4 = por %p35_p2, %p34_p1  ;;  %p41_p5 = scmp.eq.s32.totalorder %s694_s16, 0 }
   0xc   : > { %p452_p6 = scmp.lt.s32.totalorder %s651_s15, 3  ;;  %s137_s22 = sand.u32 1, %s647_s14  }
   0xd   : > { %p711_p7 = por %p41_p5, %p40_p3  ;;  %s718_s23 = sshll.u32 %s137_s22, 3 }
   0xe   : > { %s721_s24 = sshll.u32 %s651_s15, 3  ;;  %p723_p8 = pnand %p452_p6, %p36_p4 }
   0xf   : > { %s156_s26 = sand.u32 1, %s651_s15   ;;  %s164_s29 = scalar_lea.hbm %s823_s1, %s721_s24 }
  0x10   : > { %s166_s30 = sshll.u32 %s164_s29, 4  ;;  %s160_s4 = scalar_lea.vmem [#allocation5], %s718_s23  ;;  %s167_s30 = int_to_ptr.hbm [resolvable:$true] %s166_s30 }
  0x11   : > { %s168_s5 = sshll.u32 %s160_s4, 4  ;;  %s733_s6 = scalar_lea.sflag [#allocation6], %s156_s26  ;;  %s169_s5 = int_to_ptr.vmem [resolvable:$true] %s168_s5 }
  0x12   : > { %s491_s7 = sshra.s32 %s167_s30, 4  ;;  %p495_p10 = pneg %p723_p8  ;;  %s492_s7 = int_to_ptr.hbm [resolvable:$true] %s491_s7 }
  0x13   : > { %s493_s8 = scalar_lea.hbm %s492_s7, 8  ;;  %s498_s11 = scalar_lea.hbm %s823_s1, 24 }
  0x14   : > { %p494_p9 = scmp.ne.s32.totalorder %s492_s7, %s493_s8  ;;  %p499_p13 = scmp.lt.s32.totalorder %s492_s7, %s823_s1 }
  0x15   : > { %p500_p0 = scmp.lt.s32.totalorder %s498_s11, %s493_s8 }
  0x16   : > { %p496_p11 = pnand %p495_p10, %p494_p9 }
  0x17   : > { %p501_p1 = por %p500_p0, %p499_p13 }
  0x18   : > { %p497_p12 = pneg %p496_p11 }
  0x1a   : > { %p502_p2 = pnand %p501_p1, %p497_p12 }
  0x1c   : > { %505 = shalt.err (!%p502_p2)
}
  0x1d   : > { %448 = dma.hbm_to_vmem [thread:$0]  (!%p723_p8), %s167_s30, 128, %s169_s5, %s733_s6  }
  0x1e   : > { %p421_p3 = scmp.ge.s32.totalorder %s651_s15, 1  ;;  %p192_p4 = scmp.lt.s32.totalorder %s651_s15, 4 }
  0x1f   : > { %s145_s28 = scalar_lea.hbm %s822_s0, %s721_s24  ;;  %s141_s4 = scalar_lea.vmem [#allocation2], %s718_s23 }
  0x20   : > { %p751_p5 = pnand %p421_p3, %p192_p4  ;;  %s147_s29 = sshll.u32 %s145_s28, 4  ;;  %s148_s29 = int_to_ptr.hbm [resolvable:$true] %s147_s29 }
  0x21   : > { %s149_s7 = sshll.u32 %s141_s4, 4  ;;  %s138_s8 = scalar_lea.sflag [#allocation3], %s137_s22  ;;  %s150_s7 = int_to_ptr.vmem [resolvable:$true] %s149_s7 }
  0x22   : > { %s521_s9 = sshra.s32 %s148_s29, 4  ;;  %s528_s10 = scalar_lea.hbm %s822_s0, 24  ;;  %s522_s9 = int_to_ptr.hbm [resolvable:$true] %s521_s9 }
  0x23   : > { %s523_s30 = scalar_lea.hbm %s522_s9, 8  ;;  %p529_p12 = scmp.lt.s32.totalorder %s522_s9, %s822_s0 }
  0x24   : > { %p524_p6 = scmp.ne.s32.totalorder %s522_s9, %s523_s30  ;;  %p530_p13 = scmp.lt.s32.totalorder %s528_s10, %s523_s30 }
  0x26   : > { %p526_p9 = pnand %p524_p6, %p495_p10  ;;  %p531_p0 = por %p530_p13, %p529_p12 }
  0x28   : > { %p527_p11 = pneg %p526_p9 }
  0x2a   : > { %p532_p1 = pnand %p531_p0, %p527_p11 }
  0x2c   : > { %535 = shalt.err (!%p532_p1)
}
  0x2d   : > { %445 = dma.hbm_to_vmem [thread:$0]  (!%p723_p8), %s148_s29, 128, %s150_s7, %s138_s8  }
  0x2e   : > { %s183_s26 = scalar_lea.hbm %s824_s2, %s721_s24  ;;  %s179_s28 = scalar_lea.vmem [#allocation7], %s718_s23 }
  0x2f   : > { %s185_s27 = sshll.u32 %s183_s26, 4  ;;  %s187_s4 = sshll.u32 %s179_s28, 4  ;;  %s186_s27 = int_to_ptr.hbm [resolvable:$true] %s185_s27  ;;  %s188_s4 = int_to_ptr.vmem [resolvable:$true] %s187_s4 }
  0x30   : > { %s551_s9 = sshra.s32 %s186_s27, 4  ;;  %s558_s29 = scalar_lea.hbm %s824_s2, 24  ;;  %s552_s9 = int_to_ptr.hbm [resolvable:$true] %s551_s9 }
  0x31   : > { %s553_s30 = scalar_lea.hbm %s552_s9, 8  ;;  %p559_p6 = scmp.lt.s32.totalorder %s552_s9, %s824_s2 }
  0x32   : > { %p554_p2 = scmp.ne.s32.totalorder %s552_s9, %s553_s30  ;;  %p560_p9 = scmp.lt.s32.totalorder %s558_s29, %s553_s30 }
  0x34   : > { %p556_p3 = pnand %p554_p2, %p495_p10  ;;  %p561_p11 = por %p560_p9, %p559_p6 }
  0x36   : > { %p557_p4 = pneg %p556_p3 }
  0x38   : > { %p562_p12 = pnand %p561_p11, %p557_p4 }
  0x3a   : > { %565 = shalt.err (!%p562_p12)
}
  0x3b   : > { %451 = dma.hbm_to_vmem [thread:$0]  (!%p723_p8), %s186_s27, 128, %s188_s4, %s733_s6  }
  0x3c   : > { %196 = sbr.rel (%p751_p5) target bundleno = 262 (0x106), region = 32  ;;  %s198_s23 = sand.u32 (!%p751_p5), 1, %s643_s13  }
  0x3d   : > { %s422_s24 = sshll.u32 (!%p751_p5), %s198_s23, 3  ;;  %s199_s10 = scalar_lea.sflag (!%p751_p5), [#allocation3], %s198_s23 }
  0x3e   : > { %s202_s11 = scalar_lea.vmem (!%p751_p5), [#allocation2], %s422_s24 }
  0x41   : > { %626 = dma.done.wait (%p711_p7), %s199_s10, 128  }
  0x42   : > { %628 = vsyncadd (%p711_p7), %s199_s10, 4294967168  ;;  %s208_s12 = sand.u32 1, %s694_s16   ;;  %s212_s22 = scalar_lea.vmem [#allocation5], %s422_s24 }
  0x43   : > { %s209_s25 = scalar_lea.sflag [#allocation6], %s208_s12 }
  0x44   : > { %630 = dma.done.wait (%p711_p7), %s209_s25, 256  }
  0x45   : > { %632 = vsyncadd (%p711_p7), %s209_s25, 4294967040  ;;  %s222_s6 = scalar_lea.vmem [#allocation7], %s422_s24  ;;  %p425_p8 = scmp.ne.s32.totalorder %s694_s16, 0 }
  0x47   : > { %254 = sbr.rel (%p425_p8) target bundleno = 78 (0x4e), region = 48 }
  0x4c   : > { %vm255_vm0 = vcmask 0   ;;  %v653_v0 = vmov 0.0  }
  0x4d   : > { %256 = vst.msk [vmem:[#allocation8] sm:$0x1] %vm255_vm0, %v653_v0 }
  0x4e PF: > { %v257_v1 = vld [vmem:[%s202_s11] sm:$0xff]  ;;  %v258_v3 = vld [vmem:[%s212_s22] sm:$0xff]  ;;  %v286_v16 = vlaneseq  ;;  %s426_s21 = sshll.u32 %s694_s16, 3  ;;  %vm301_vm4 = vcmask 0   ;;  %p427_p7 = scmp.ne.s32.totalorder %s694_s16, 2 }
  0x4f   : > { %v259_v2 = vld [vmem:[%s222_s6] sm:$0xff]  ;;  %v260_v6 = vsub.f32 %v257_v1, %v258_v3  ;;  %v289_v22 = vstv %s426_s21 }
  0x50   : > { %v262_v4 = vsub.f32 %v257_v1, %v259_v2  ;;  %v287_v20 = vshrl.u32 %v286_v16, 7 }
  0x51   : > { %v261_v8 = vadd.f32 1e-06, %v260_v6 }
  0x52   : > { %v263_v5 = vadd.f32 1e-06, %v262_v4  ;;  %v290_v25 = vadd.s32 %v289_v22, %v287_v20 }
  0x53   : > { %v264_v9 = vmul.f32 %v261_v8, %v261_v8 }
  0x54   : > { %v267_v7 = vmul.f32 %v263_v5, %v263_v5  ;;  %vm291_vm3 = vcmp.lt.s32.totalorder %v290_v25, 20  ;;  %v293_v36 = vld [vmem:[#allocation8] sm:$0x1] }
  0x56   : > { %268 = vadd.xlane.f32.xlu0 %v267_v7 }
  0x5e   : > { %265 = vadd.xlane.f32.xlu0 %v264_v9 }
  0xc9   : > { %v269_v10 = vpop.xlane.xlu0 %268 }
  0xca   : > { %489 = vrsqrt.f32 %v269_v10  ;;  %vm277_vm1 = vcmp.eq.f32.partialorder %v269_v10, inf  ;;  %v280_v19 = vand.u32 2147483648, %v269_v10  ;;  %vm279_vm2 = vcmp.eq.f32.partialorder %v269_v10, 0.0 }
  0xd0   : > { %v490_v11 = vpop.eup %489 }
  0xd1   : > { %v271_v12 = vmul.f32 %v490_v11, %v269_v10  ;;  %v266_v27 = vpop.xlane.xlu0 %265 }
  0xd3   : > { %v272_v13 = vmul.f32 %v490_v11, %v271_v12 }
  0xd5   : > { %v273_v14 = vmul.f32 0.5, %v272_v13 }
  0xd7   : > { %v274_v15 = vsub.f32 1.5, %v273_v14 }
  0xd9   : > { %v275_v17 = vmul.f32 %v490_v11, %v274_v15 }
  0xdb   : > { %v276_v18 = vmul.f32 %v275_v17, %v269_v10 }
  0xdd   : > { %v278_v21 = vsel %vm277_vm1, %v269_v10, %v276_v18 }
  0xde   : > { %v281_v23 = vsel %vm279_vm2, %v280_v19, %v278_v21 }
  0xdf   : > { %v282_v24 = vsub.f32 1.0, %v281_v23 }
  0xe1   : > { %v283_v26 = vmax.f32 %v282_v24, 0.0 }
  0xe3   : > { %v284_v28 = vmul.f32 %v283_v26, %v283_v26 }
  0xe5   : > { %v285_v29 = vadd.f32 %v284_v28, %v266_v27 }
  0xe7   : > { %v292_v30 = vsel %vm291_vm3, %v285_v29, 0.0 }
  0xe8   : > { %v294_v31 = vrot.slane %v292_v30, 4 }
  0xea   : > { %v295_v32 = vadd.f32 %v294_v31, %v292_v30 }
  0xec   : > { %v296_v33 = vrot.slane %v295_v32, 2 }
  0xee   : > { %v297_v34 = vadd.f32 %v296_v33, %v295_v32 }
  0xf0   : > { %v298_v35 = vrot.slane %v297_v34, 1 }
  0xf2   : > { %v299_v37 = vadd.f32 %v298_v35, %v297_v34  ;;  %306 = sbr.rel (%p427_p7) target bundleno = 257 (0x101), region = 52 }
  0xf4   : > { %v300_v38 = vadd.f32 %v299_v37, %v293_v36 }
  0xf6   : > { %302 = vst.msk [vmem:[#allocation8] sm:$0x1] %vm301_vm4, %v300_v38 }
  0xfd   : > { %v307_v39 = vld [vmem:[#allocation8] sm:$0x1] }
  0xfe   : > { %v308_v40 = vmul.f32 0.05, %v307_v39 }
 0x100   : > { %309 = vst.msk [vmem:[#allocation8] sm:$0x1] %vm301_vm4, %v308_v40 }
 0x101 PF: > { %p453_p10 = scmp.eq.s32.totalorder %s694_s16, 2  ;;  %s654_s19 = smov [#allocation8]  }
 0x102   : > { %s316_s18 = sshll.u32 %s654_s19, 4  ;;  %s318_s28 = sshll.u32 %s825_s3, 4  ;;  %s317_s18 = int_to_ptr.vmem [resolvable:$true] %s316_s18  ;;  %s319_s28 = int_to_ptr.hbm [resolvable:$true] %s318_s28 }
 0x103   : > { %439 = dma.vmem_to_hbm [thread:$0]  (%p453_p10), %s317_s18, 16, %s319_s28, [#allocation4]  }
 0x104   : > { %634 = dma.done.wait (%p453_p10), [#allocation4], 16  }
 0x105   : > { %636 = vsyncadd (%p453_p10), [#allocation4], 4294967280 }
 0x106 PF: > { %p17_p5 = scmp.ge.s32.totalorder %s697_s17, 5   ;;  %s829_s12 = smov %s643_s13 }
 0x107   : > { %s830_s13 = smov %s647_s14  ;;  %s831_s14 = smov %s707_s20 }
 0x108   : > { %s832_s15 = smov %s697_s17  ;;  %19 = sbr.rel (!%p17_p5) target bundleno = 6 (0x6), region = 101 }
 0x10d   :  { %332 = vsyncpa [#allocation3], 1 }
 0x10e   :  { %334 = vsyncpa [#allocation3 + $0x1], 1 }
 0x10f   :  { %335 = vsyncpa [#allocation6], 1 }
 0x110   :  { %337 = vsyncpa [#allocation6 + $0x1], 1 }
 0x111   :  { %338 = vsyncpa [#allocation4], 1 }
 0x112   :  { %340 = vsyncpa [#allocation4 + $0x1], 1 }

</bundles_post_ra>
